<compile_context>
chip_gen: v7x
topology: tpu7x:2x2x1
jax: 0.10.0
libtpu: 0.0.40
codegen_flags: <defaults>
</compile_context>

<pallas_src>
import math

import jax
import jax.numpy as jnp
from jax.experimental import pallas as pl
from jax.experimental.pallas import tpu as pltpu


def encoder_kernel(ws_ref, wn_ref, self_ref, neigh_ref, out_ref):
    # neigh_feats[torch.isnan(neigh_feats)] = 0.01  (neigh tile only; self_feats untouched)
    neigh = neigh_ref[...]
    neigh = jnp.where(jnp.isnan(neigh), jnp.bfloat16(0.01), neigh)

    # out_tile[tn, E] = self_tile @ w_self.T + neigh_tile @ w_neigh.T
    # Native MXU layouts on both dots (no XLU transpose of the streamed tiles).
    acc = jnp.dot(self_ref[...], ws_ref[...], preferred_element_type=jnp.float32)
    acc = acc + jnp.dot(neigh, wn_ref[...], preferred_element_type=jnp.float32)

    # F.relu
    out_ref[...] = jnp.maximum(acc, 0.0)


def _round_up(x, m):
    return -(-x // m) * m


def encoder_forward(weight, self_feats, neigh_feats, feat_dim, *, tile_n=2048):
    """weight: [E, F+E] f32, self_feats: [N, F], neigh_feats: [N, E]  ->  [E, N] f32."""
    embed_dim, in_dim = weight.shape
    assert in_dim == feat_dim + embed_dim, "gcn=True weight expected"
    n = self_feats.shape[0]

    # Split + pre-transpose the tiny resident weight wrapper-side (no concat of the big
    # feature operand, no in-kernel transposes).
    w_self_t = weight[:, :feat_dim].T.astype(jnp.bfloat16)    # [F, E]
    w_neigh_t = weight[:, feat_dim:].T.astype(jnp.bfloat16)   # [E, E]

    # Stream features as bf16 (NaNs preserved by the cast; fixed in-kernel).
    self_bf = self_feats.astype(jnp.bfloat16)
    neigh_bf = neigh_feats.astype(jnp.bfloat16)

    # Node tile: multiple of 128 (lane-dense, (8,128)-clean), capped so the grid has
    # >=4 steps for v7x's two TensorCores; tiny N uses one full-array block.
    tn = min(tile_n, _round_up(pl.cdiv(n, 4), 128))
    tn = min(max(tn, 128), n)
    grid = (pl.cdiv(n, tn),)

    cost = pl.CostEstimate(
        flops=2 * n * embed_dim * in_dim,
        transcendentals=0,
        bytes_accessed=(n * in_dim + embed_dim * in_dim) * 2 + n * embed_dim * 4,
    )

    out = pl.pallas_call(
        encoder_kernel,
        out_shape=jax.ShapeDtypeStruct((n, embed_dim), jnp.float32),
        grid=grid,
        in_specs=[
            # resident weights (same block every step)
            pl.BlockSpec((feat_dim, embed_dim), lambda i: (0, 0)),
            pl.BlockSpec((embed_dim, embed_dim), lambda i: (0, 0)),
            # feature streams: one node tile per grid step, double-buffered by Pallas
            pl.BlockSpec((tn, feat_dim), lambda i: (i, 0)),
            pl.BlockSpec((tn, embed_dim), lambda i: (i, 0)),
        ],
        out_specs=pl.BlockSpec((tn, embed_dim), lambda i: (i, 0)),
        compiler_params=pltpu.CompilerParams(
            # node tiles are independent -> v7x's 2 TCs split the grid
            dimension_semantics=("parallel",),
        ),
        cost_estimate=cost,
    )(w_self_t, w_neigh_t, self_bf, neigh_bf)

    # Module returns [embed_dim, N]; transpose the small result once outside the kernel.
    return out.T


if __name__ == "__main__":
    key = jax.random.PRNGKey(0)
    k_feat, k_w, k_neigh = jax.random.split(key, 3)

    num_nodes = 64          # size of the node-feature table
    feat_dim = 16           # self.feat_dim
    embed_dim = 32          # self.embed_dim
    batch = 8               # len(nodes)
    num_sample = 4          # neighbours sampled per node (aggregator)

    # node_features embedding table (glue, stands in for nn.Embedding lookup)
    node_features = jax.random.normal(k_feat, (num_nodes, feat_dim), jnp.float32)

    # Xavier-uniform init of self.weight: [embed_dim, feat_dim + embed_dim]  (gcn=True)
    in_dim = feat_dim + embed_dim
    bound = math.sqrt(6.0 / (embed_dim + in_dim))
    weight = jax.random.uniform(k_w, (embed_dim, in_dim), jnp.float32, -bound, bound)

    # batch of nodes
    nodes = jnp.arange(batch, dtype=jnp.int32)

    # TODO(synk): the MeanAggregator's neighbour sampling / sparse mean is a separate
    # module; it is approximated here with a dense gather+mean in plain JAX.
    neigh_table = jax.random.normal(k_neigh, (num_nodes, embed_dim), jnp.float32)
    adj = (jnp.arange(batch)[:, None] + jnp.arange(1, num_sample + 1)[None, :]) % num_nodes
    neigh_feats = jnp.mean(neigh_table[adj], axis=1)
    # inject a NaN so the gcn NaN-fix path in the kernel is exercised
    neigh_feats = neigh_feats.at[0, 0].set(jnp.nan)

    # self_feats = node_features(LongTensor(nodes))
    self_feats = node_features[nodes]

    out = encoder_forward(weight, self_feats, neigh_feats, feat_dim)
    out = jax.block_until_ready(out)

    # plain-JAX f32 reference of the same forward pass
    neigh_fixed = jnp.where(jnp.isnan(neigh_feats), 0.01, neigh_feats)
    combined = jnp.concatenate([self_feats, neigh_fixed], axis=1)
    ref = jnp.maximum(weight @ combined.T, 0.0)

    assert out.shape == (embed_dim, batch)
    assert not jnp.isnan(out).any(), "NaN leaked through the gcn NaN-fix path"
    # bf16-streamed operands vs f32 reference -> loose tolerance
    assert jnp.allclose(out, ref, atol=5e-2, rtol=5e-2), "Pallas kernel mismatch vs reference"
    print("KERNEL_OK")
</pallas_src>

<mosaic_0001>
module attributes {stable_mosaic.version = 11 : i64} {
  func.func @encoder_kernel(%arg0: i32, %arg1: memref<16x32xbf16, #tpu.memory_space<vmem>>, %arg2: memref<32x32xbf16, #tpu.memory_space<vmem>>, %arg3: memref<8x16xbf16, #tpu.memory_space<vmem>>, %arg4: memref<8x32xbf16, #tpu.memory_space<vmem>>, %arg5: memref<8x32xf32, #tpu.memory_space<vmem>>) attributes {dimension_semantics = [#tpu.dimension_semantics<parallel>], iteration_bounds = array<i64: 1>, scalar_prefetch = 0 : i64, scratch_operands = 0 : i64, tpu.core_type = #tpu.core_type<tc>, window_params = [{pipeline_mode = #tpu.pipeline_mode<synchronous>, transform_indices = @transform_0, window_bounds = array<i64: 16, 32>}, {pipeline_mode = #tpu.pipeline_mode<synchronous>, transform_indices = @transform_1, window_bounds = array<i64: 32, 32>}, {transform_indices = @transform_2, window_bounds = array<i64: 8, 16>}, {transform_indices = @transform_3, window_bounds = array<i64: 8, 32>}, {transform_indices = @transform_4, window_bounds = array<i64: 8, 32>}]} {
    %c0 = arith.constant 0 : index
    %c0_0 = arith.constant 0 : index
    %0 = vector.load %arg4[%c0, %c0_0] : memref<8x32xbf16, #tpu.memory_space<vmem>>, vector<8x32xbf16>
    %1 = arith.cmpf one, %0, %0 : vector<8x32xbf16>
    %cst = arith.constant 1.000980e-02 : bf16
    %2 = vector.broadcast %cst : bf16 to vector<8x32xbf16>
    %3 = arith.select %1, %2, %0 : vector<8x32xi1>, vector<8x32xbf16>
    %c0_1 = arith.constant 0 : index
    %c0_2 = arith.constant 0 : index
    %4 = vector.load %arg3[%c0_1, %c0_2] : memref<8x16xbf16, #tpu.memory_space<vmem>>, vector<8x16xbf16>
    %c0_3 = arith.constant 0 : index
    %c0_4 = arith.constant 0 : index
    %5 = vector.load %arg1[%c0_3, %c0_4] : memref<16x32xbf16, #tpu.memory_space<vmem>>, vector<16x32xbf16>
    %cst_5 = arith.constant dense<0.000000e+00> : vector<8x32xf32>
    %6 = tpu.matmul %4, %5, %cst_5 {dimension_numbers = #tpu.dot_dimension_numbers<[1], [0], [0], [1], [0, 0, 1, 1], [], []>} : vector<8x16xbf16>, vector<16x32xbf16>, vector<8x32xf32> -> vector<8x32xf32>
    %c0_6 = arith.constant 0 : index
    %c0_7 = arith.constant 0 : index
    %7 = vector.load %arg2[%c0_6, %c0_7] : memref<32x32xbf16, #tpu.memory_space<vmem>>, vector<32x32xbf16>
    %cst_8 = arith.constant dense<0.000000e+00> : vector<8x32xf32>
    %8 = tpu.matmul %3, %7, %cst_8 {dimension_numbers = #tpu.dot_dimension_numbers<[1], [0], [0], [1], [0, 0, 1, 1], [], []>} : vector<8x32xbf16>, vector<32x32xbf16>, vector<8x32xf32> -> vector<8x32xf32>
    %9 = arith.addf %6, %8 : vector<8x32xf32>
    %cst_9 = arith.constant 0.000000e+00 : f32
    %10 = vector.broadcast %cst_9 : f32 to vector<8x32xf32>
    %11 = arith.maximumf %9, %10 : vector<8x32xf32>
    %c0_10 = arith.constant 0 : index
    %c0_11 = arith.constant 0 : index
    %12 = vector.load %arg5[%c0_10, %c0_11] : memref<8x32xf32, #tpu.memory_space<vmem>>, vector<8x32xf32>
    tpu.vector_store %arg5[%c0_10, %c0_11], %11 {strides = array<i32>} : memref<8x32xf32, #tpu.memory_space<vmem>>, vector<8x32xf32>,
    return
  }
  func.func @transform_0(%arg0: i32) -> (i32, i32) {
    %c0_i32 = arith.constant 0 : i32
    %c0_i32_0 = arith.constant 0 : i32
    %c0_i32_1 = arith.constant 0 : i32
    return %c0_i32, %c0_i32_0 : i32, i32
  }
  func.func @transform_1(%arg0: i32) -> (i32, i32) {
    %c0_i32 = arith.constant 0 : i32
    %c0_i32_0 = arith.constant 0 : i32
    %c0_i32_1 = arith.constant 0 : i32
    return %c0_i32, %c0_i32_0 : i32, i32
  }
  func.func @transform_2(%arg0: i32) -> (i32, i32) {
    %c0_i32 = arith.constant 0 : i32
    %c0_i32_0 = arith.constant 0 : i32
    return %arg0, %c0_i32 : i32, i32
  }
  func.func @transform_3(%arg0: i32) -> (i32, i32) {
    %c0_i32 = arith.constant 0 : i32
    %c0_i32_0 = arith.constant 0 : i32
    return %arg0, %c0_i32 : i32, i32
  }
  func.func @transform_4(%arg0: i32) -> (i32, i32) {
    %c0_i32 = arith.constant 0 : i32
    %c0_i32_0 = arith.constant 0 : i32
    return %arg0, %c0_i32 : i32, i32
  }
}

</mosaic_0001>

<bundles_post_ra>
// kernel: tpu_custom_call.1
= control target key start
LH: loop header
LB: loop body
LE: loop exit
PB: predicated region body
PF: predicated region fallthrough
CT: control target
= control target key end

     0   :  { %9 = vsyncpa [#allocation3], 0  ;;  %s363_s0 = inlined_call_operand.hbm [shape: bf16[16,32], index: 0, kind: input, shape index: {}]   ;;  %s364_s1 = inlined_call_operand.hbm [shape: bf16[32,32], index: 1, kind: input, shape index: {}]   ;;  %s365_s2 = inlined_call_operand.vmem [shape: bf16[8,16], index: 2, kind: input, shape index: {}]   ;;  %s366_s3 = inlined_call_operand.vmem [shape: bf16[8,32], index: 3, kind: input, shape index: {}]   ;;  %s367_s4 = inlined_call_operand.hbm [shape: f32[8,32], index: 4, kind: output, shape index: {}]  }
   0x1   :  { %10 = vsyncpa [#allocation6], 0 }
   0x2   :  { %11 = vsyncpa [#allocation4], 0  ;;  %s289_s15 = smov [#allocation2]   ;;  %s217_s19 = scalar_lea.hbm %s363_s0, 128 }
   0x3   :  { %s17_s16 = sshll.u32 %s289_s15, 4  ;;  %p218_p0 = scmp.ne.s32.totalorder %s363_s0, %s217_s19  ;;  %s18_s16 = int_to_ptr.vmem [resolvable:$true] %s17_s16 }
   0x4   :  { %p221_p1 = scmp.lt.u32.totalorder %s217_s19, %s363_s0 }
   0x6   :  { %p223_p2 = pnand %p221_p1, %p218_p0 }
   0x8   :  { %226 = shalt.err (!%p223_p2)
}
   0x9   :  { %s227_s24 = scalar_lea.vmem %s18_s16, 128  ;;  %p232_p4 = scmp.lt.s32.totalorder %s18_s16, %s18_s16 }
   0xa   :  { %p228_p3 = scmp.ne.s32.totalorder %s18_s16, %s227_s24  ;;  %p233_p5 = scmp.lt.s32.totalorder %s227_s24, %s227_s24 }
   0xc   :  { %p234_p6 = por %p233_p5, %p232_p4 }
   0xe   :  { %p235_p7 = pnand %p234_p6, %p228_p3 }
  0x10   :  { %238 = shalt.err (!%p235_p7)
}
  0x11   :  { %s290_s25 = smov 64   ;;  %s291_s26 = smov 4  }
  0x12   :  { %23 = dma.hbm_to_vmem [thread:$0]  %s363_s0, 128, %s18_s16, [#allocation3], %s290_s25, %s290_s25, %s291_s26  }
  0x13   :  { %s292_s29 = smov [#allocation5]   ;;  %s239_s7 = scalar_lea.hbm %s364_s1, 256 }
  0x14   :  { %s29_s30 = sshll.u32 %s292_s29, 4  ;;  %p240_p8 = scmp.ne.s32.totalorder %s364_s1, %s239_s7  ;;  %s30_s30 = int_to_ptr.vmem [resolvable:$true] %s29_s30 }
  0x15   :  { %p243_p9 = scmp.lt.u32.totalorder %s239_s7, %s364_s1 }
  0x17   :  { %p245_p10 = pnand %p243_p9, %p240_p8 }
  0x19   :  { %248 = shalt.err (!%p245_p10)
}
  0x1a   :  { %s249_s12 = scalar_lea.vmem %s30_s30, 256  ;;  %p254_p12 = scmp.lt.s32.totalorder %s30_s30, %s30_s30 }
  0x1b   :  { %p250_p11 = scmp.ne.s32.totalorder %s30_s30, %s249_s12  ;;  %p255_p13 = scmp.lt.s32.totalorder %s249_s12, %s249_s12 }
  0x1d   :  { %p256_p0 = por %p255_p13, %p254_p12 }
  0x1f   :  { %p257_p1 = pnand %p256_p0, %p250_p11 }
  0x21   :  { %260 = shalt.err (!%p257_p1)
}
  0x22   :  { %35 = dma.hbm_to_vmem [thread:$0]  %s364_s1, 256, %s30_s30, [#allocation6], %s290_s25, %s290_s25, %s291_s26  }
  0x23   :  { %283 = dma.done.wait [#allocation3], 128  }
  0x24   :  { %284 = vsyncadd [#allocation3], 4294967168 }
  0x25   :  { %285 = dma.done.wait [#allocation6], 256  }
  0x26   :  { %286 = vsyncadd [#allocation6], 4294967040  ;;  %v293_v0 = vmov 0.0   ;;  %vm294_vm0 = vmmov 0   ;;  %v214_v1 = vld [vmem:[#allocation5] sm:$0xff]   ;;  %v215_v2 = vld [vmem:[#allocation2] sm:$0xff]  }
  0x27   :  { %192 = vmatprep.subr.bf16.mxu1 %v293_v0  ;;  %200 = vmatprep.subr.bf16.mxu0 %v293_v0  ;;  %v216_v3 = vld [vmem:[#allocation5 + $0x8] sm:$0xff]   ;;  %v51_v4 = vld [vmem:[%s365_s2] sm:$0xf]  ;;  %vm120_vm1 = vcmask 130048   ;;  %vm70_vm3 = vcmask 261120   ;;  %s295_s17 = smov [#allocation7]  }
  0x28   :  { %202 = vmatprep.mubr.msk.bf16.mxu0 %vm294_vm0, %v293_v0  ;;  %196 = vmatprep.mubr.msk.bf16.mxu1 %vm294_vm0, %v293_v0  ;;  %v48_v5 = vld [vmem:[%s366_s3] sm:$0xf]  ;;  %s172_s18 = sshll.u32 %s295_s17, 4  ;;  %s173_s18 = int_to_ptr.vmem [resolvable:$true] %s172_s18 }
  0x29   :  { %193 = vmatpush3.bf16.msra.mxu1 %v214_v1  ;;  %201 = vmatpush3.bf16.msra.mxu0 %v215_v2  ;;  %vm49_vm2 = vcmp.ne.bf16.partialorder %v48_v5, %v48_v5  ;;  %s261_s2 = scalar_lea.vmem %s173_s18, 128  ;;  %p266_p3 = scmp.lt.s32.totalorder %s173_s18, %s173_s18 }
  0x2a   :  { %194 = vmatprep.subr.bf16.mxu1 %v293_v0  ;;  %v50_v6 = vsel %vm49_vm2, 1009007652, %v48_v5  ;;  %p262_p2 = scmp.ne.s32.totalorder %s173_s18, %s261_s2  ;;  %p267_p4 = scmp.lt.s32.totalorder %s261_s2, %s261_s2 }
  0x2c   :  { %203 = vmatmul.mubr.msk.bf16.vlgmr.msra.gmra.mrb[0].mxu0 %vm120_vm1, %v51_v4  ;;  %p268_p5 = por %p267_p4, %p266_p3 }
  0x2d   :  { %195 = vmatpush3.bf16.msra.mxu1 %v216_v3 }
  0x2e   :  { %p269_p6 = pnand %p268_p5, %p262_p2 }
  0x30   :  { %197 = vmatmul.mubr.msk.bf16.vlgmr.msra.gmra.mrb[0].mxu1 %vm70_vm3, %v50_v6 }
  0xff   :  { %v158_v7 = vpop.f32.mrb[0].mxu0 }
 0x100   :  { %v204_v8 = vpop.f32.mrb[1].mxu0 }
 0x101   :  { %v161_v9 = vpop.f32.mrb[2].mxu0 }
 0x102   :  { %v205_v11 = vpop.f32.mrb[3].mxu0 }
 0x103   :  { %v108_v10 = vpop.f32.mrb[0].mxu1 }
 0x104   :  { %v159_v12 = vadd.f32 %v158_v7, %v108_v10  ;;  %v198_v13 = vpop.f32.mrb[1].mxu1 }
 0x105   :  { %v111_v14 = vpop.f32.mrb[2].mxu1 }
 0x106   :  { %v164_v15 = vmax.f32 %v159_v12, 0.0  ;;  %v199_v16 = vpop.f32.mrb[3].mxu1 }
 0x108   :  { %165 = vst.msk [vmem:[#allocation7] sm:$0xff] %vm70_vm3, %v164_v15 }
 0x109   :  { %272 = shalt.err (!%p269_p6)
}
 0x10a   :  { %s273_s20 = scalar_lea.hbm %s367_s4, 128 }
 0x10b   :  { %p274_p7 = scmp.ne.s32.totalorder %s367_s4, %s273_s20  ;;  %p277_p8 = scmp.lt.u32.totalorder %s273_s20, %s367_s4 }
 0x10d   :  { %p279_p9 = pnand %p277_p8, %p274_p7 }
 0x10f   :  { %282 = shalt.err (!%p279_p9)
}
 0x110   :  { %175 = dma.vmem_to_hbm [thread:$0]  %s173_s18, 128, %s367_s4, [#allocation4]  }
 0x111   :  { %287 = dma.done.wait [#allocation4], 128  }
 0x112   :  { %288 = vsyncadd [#allocation4], 4294967168 }
 0x113   :  { %179 = vsyncpa [#allocation3], 1 }
 0x114   :  { %180 = vsyncpa [#allocation6], 1 }
 0x115   :  { %181 = vsyncpa [#allocation4], 1 }

</bundles_post_ra>
